<compile_context>
chip_gen: v5e
topology: v5e:2x2
jax: 0.10.0
libtpu: 0.0.40
codegen_flags: <defaults>
</compile_context>

<pallas_src>
import functools

import jax
import jax.numpy as jnp
from jax.experimental import pallas as pl
from jax.experimental.pallas import tpu as pltpu


def _round_up(x, m):
    return (x + m - 1) // m * m


def _latent_rnn_kernel(drive_ref, wrec_ref, states_ref, s_ref, *, alpha):
    """One (batch_tile, time_chunk) block of the recurrence.

    drive_ref:  (TC, B_TILE, n_pad) VMEM   drive[g] = u[g-1]@W_in.T + noise[g-1]
                                           (zero row for g == 0)
    wrec_ref:   (n_pad, n_pad)      VMEM   W_rec.T, zero-padded
    states_ref: (TC, B_TILE, n_pad) VMEM   output states for this chunk
    s_ref:      (B_TILE, n_pad)     VMEM   carried state across time chunks
    """
    # Reset the carried state at the start of each batch tile's time loop.
    @pl.when(pl.program_id(1) == 0)
    def _():
        s_ref[...] = jnp.zeros_like(s_ref)

    wrec = wrec_ref[...]
    tc = drive_ref.shape[0]

    def body(j, s):
        pre = (jnp.dot(s, wrec, preferred_element_type=jnp.float32)
               + drive_ref[j])
        s_new = (1.0 - alpha) * s + alpha * jnp.maximum(pre, 0.0)
        states_ref[j] = s_new
        return s_new

    s_final = jax.lax.fori_loop(0, tc, body, s_ref[...], unroll=min(tc, 8))
    s_ref[...] = s_final


def latent_net_forward(u, w_rec, w_in, *, alpha, sigma_rec, noise_key,
                       time_chunk=64, batch_tile=64):
    """Pallas equivalent of LatentNet.forward.

    u:     (B, T, input_size) float32
    w_rec: (n, n)              -- recurrent_layer.weight (nn.Linear convention)
    w_in:  (n, input_size)     -- input_layer.weight
    returns states: (B, T, n) float32
    """
    B, T, _ = u.shape
    n = w_rec.shape[0]
    alpha = float(alpha)
    sigma_rec = float(sigma_rec)

    # Noise (matches torch.empty(...).normal_() semantics up to the RNG stream).
    noise = jnp.sqrt(2.0 * alpha * sigma_rec ** 2) * jax.random.normal(
        noise_key, (B, T, n), dtype=jnp.float32)

    # --- hoisted, time-independent input projection (one big matmul) ---
    win_t = jnp.asarray(w_in, jnp.float32).T                       # (in, n)
    u_proj = jnp.einsum('bti,in->btn', u.astype(jnp.float32), win_t) + noise

    # --- padded, time-major layout for lane/sublane-dense tiles ---
    n_pad = _round_up(n, 128)
    b_tile = min(_round_up(B, 8), batch_tile)
    b_pad = _round_up(B, b_tile)
    tc = min(T, time_chunk)
    t_pad = _round_up(T, tc)

    # drive[g] = u_proj[:, g-1, :] for g >= 1, drive[0] = 0; zero-pad B/T/n.
    drive = jnp.pad(u_proj[:, :T - 1, :],
                    ((0, b_pad - B), (1, t_pad - T), (0, n_pad - n)))
    drive_t = jnp.transpose(drive, (1, 0, 2))                      # (T_pad, B_pad, n_pad)

    wrec_t = jnp.pad(jnp.asarray(w_rec, jnp.float32).T,
                     ((0, n_pad - n), (0, n_pad - n)))             # (n_pad, n_pad)

    kernel = functools.partial(_latent_rnn_kernel, alpha=alpha)
    grid = (b_pad // b_tile, t_pad // tc)

    states_t = pl.pallas_call(
        kernel,
        out_shape=jax.ShapeDtypeStruct((t_pad, b_pad, n_pad), jnp.float32),
        grid_spec=pltpu.PrefetchScalarGridSpec(
            num_scalar_prefetch=0,
            grid=grid,
            in_specs=[
                pl.BlockSpec((tc, b_tile, n_pad), lambda b, t: (t, b, 0)),
                pl.BlockSpec((n_pad, n_pad), lambda b, t: (0, 0)),
            ],
            out_specs=pl.BlockSpec((tc, b_tile, n_pad), lambda b, t: (t, b, 0)),
            scratch_shapes=[pltpu.VMEM((b_tile, n_pad), jnp.float32)],
        ),
        compiler_params=pltpu.CompilerParams(
            dimension_semantics=("parallel", "arbitrary")),
    )(drive_t, wrec_t)

    # Back to the PyTorch (B, T, n) convention, dropping padding.
    return jnp.transpose(states_t[:T, :B, :n], (1, 0, 2))


def _reference_forward(u, w_rec, w_in, noise, alpha):
    """Pure-JAX reference mirroring the PyTorch loop."""
    B, T, _ = u.shape
    n = w_rec.shape[0]
    states = [jnp.zeros((B, n), jnp.float32)]
    for i in range(T - 1):
        s = states[i]
        pre = s @ w_rec.T + u[:, i, :] @ w_in.T + noise[:, i, :]
        states.append((1 - alpha) * s + alpha * jnp.maximum(pre, 0.0))
    return jnp.stack(states, axis=1)


if __name__ == "__main__":
    # Small, forward-relevant config: n (hidden), input_size, batch, T.
    n = 32
    input_size = 6
    B = 2
    T = 8
    alpha = 0.2
    sigma_rec = 0.15

    key = jax.random.PRNGKey(0)
    k_u, k_rec, k_in, k_noise = jax.random.split(key, 4)

    # Deterministic parameter init matching the module's shapes/stats:
    #   recurrent_layer.weight (n, n): N(0, 1/n)
    #   input_layer.weight (n, input_size): N(1/sqrt(n), 1/sqrt(n))
    w_rec = (1.0 / n) * jax.random.normal(k_rec, (n, n), jnp.float32)
    w_in = (1.0 / jnp.sqrt(n)) + (1.0 / jnp.sqrt(n)) * jax.random.normal(
        k_in, (n, input_size), jnp.float32)
    # TODO(synk): output_layer / a / cayley_transform(q) are not used in
    # forward(), so they are not part of the kernel.

    u = jax.random.normal(k_u, (B, T, input_size), jnp.float32)

    states = latent_net_forward(
        u, w_rec, w_in, alpha=alpha, sigma_rec=sigma_rec, noise_key=k_noise)
    states = jax.block_until_ready(states)
    assert states.shape == (B, T, n)

    # Correctness check against a pure-JAX reference using the same noise.
    noise = jnp.sqrt(2.0 * alpha * sigma_rec ** 2) * jax.random.normal(
        k_noise, (B, T, n), dtype=jnp.float32)
    ref = _reference_forward(u, w_rec, w_in, noise, alpha)
    assert jnp.allclose(states, ref, atol=1e-5, rtol=1e-5)

    print("KERNEL_OK")
</pallas_src>

<mosaic_0001>
module attributes {stable_mosaic.version = 11 : i64} {
  func.func @_latent_rnn_kernel(%arg0: i32, %arg1: i32, %arg2: memref<8x8x128xf32, #tpu.memory_space<vmem>>, %arg3: memref<128x128xf32, #tpu.memory_space<vmem>>, %arg4: memref<8x8x128xf32, #tpu.memory_space<vmem>>, %arg5: memref<8x128xf32, #tpu.memory_space<vmem>>) attributes {dimension_semantics = [#tpu.dimension_semantics<parallel>, #tpu.dimension_semantics<arbitrary>], iteration_bounds = array<i64: 1, 1>, scalar_prefetch = 0 : i64, scratch_operands = 1 : i64, tpu.core_type = #tpu.core_type<tc>, window_params = [{transform_indices = @transform_0, window_bounds = array<i64: 8, 8, 128>}, {pipeline_mode = #tpu.pipeline_mode<synchronous>, transform_indices = @transform_1, window_bounds = array<i64: 128, 128>}, {transform_indices = @transform_2, window_bounds = array<i64: 8, 8, 128>}]} {
    %c0_i32 = arith.constant 0 : i32
    %0 = arith.cmpi eq, %arg1, %c0_i32 : i32
    %1 = arith.extui %0 : i1 to i32
    %c0_i32_0 = arith.constant 0 : i32
    %2 = arith.cmpi ne, %1, %c0_i32_0 : i32
    scf.if %2 {
      %cst_70 = arith.constant 0.000000e+00 : f32
      %134 = vector.broadcast %cst_70 : f32 to vector<8x128xf32>
      %c0_71 = arith.constant 0 : index
      %c0_72 = arith.constant 0 : index
      %135 = vector.load %arg5[%c0_71, %c0_72] : memref<8x128xf32, #tpu.memory_space<vmem>>, vector<8x128xf32>
      tpu.vector_store %arg5[%c0_71, %c0_72], %134 {strides = array<i32>} : memref<8x128xf32, #tpu.memory_space<vmem>>, vector<8x128xf32>,
    } else {
    }
    %c0 = arith.constant 0 : index
    %c0_1 = arith.constant 0 : index
    %3 = vector.load %arg3[%c0, %c0_1] : memref<128x128xf32, #tpu.memory_space<vmem>>, vector<128x128xf32>
    %c0_2 = arith.constant 0 : index
    %c0_3 = arith.constant 0 : index
    %4 = vector.load %arg5[%c0_2, %c0_3] : memref<8x128xf32, #tpu.memory_space<vmem>>, vector<8x128xf32>
    %c0_i32_4 = arith.constant 0 : i32
    %cst = arith.constant dense<0.000000e+00> : vector<8x128xf32>
    %5 = tpu.matmul %4, %3, %cst {dimension_numbers = #tpu.dot_dimension_numbers<[1], [0], [0], [1], [0, 0, 1, 1], [], []>} : vector<8x128xf32>, vector<128x128xf32>, vector<8x128xf32> -> vector<8x128xf32>
    %6 = arith.index_cast %c0_i32_4 : i32 to index
    %c0_5 = arith.constant 0 : index
    %c0_6 = arith.constant 0 : index
    %7 = vector.load %arg2[%6, %c0_5, %c0_6] : memref<8x8x128xf32, #tpu.memory_space<vmem>>, vector<1x8x128xf32>
    %8 = vector.shape_cast %7 : vector<1x8x128xf32> to vector<8x128xf32>
    %9 = arith.addf %5, %8 : vector<8x128xf32>
    %cst_7 = arith.constant 8.000000e-01 : f32
    %10 = vector.broadcast %cst_7 : f32 to vector<8x128xf32>
    %11 = arith.mulf %10, %4 : vector<8x128xf32>
    %cst_8 = arith.constant 0.000000e+00 : f32
    %12 = vector.broadcast %cst_8 : f32 to vector<8x128xf32>
    %13 = arith.maximumf %9, %12 : vector<8x128xf32>
    %cst_9 = arith.constant 2.000000e-01 : f32
    %14 = vector.broadcast %cst_9 : f32 to vector<8x128xf32>
    %15 = arith.mulf %14, %13 : vector<8x128xf32>
    %16 = arith.addf %11, %15 : vector<8x128xf32>
    %17 = arith.index_cast %c0_i32_4 : i32 to index
    %c0_10 = arith.constant 0 : index
    %c0_11 = arith.constant 0 : index
    %18 = vector.load %arg4[%17, %c0_10, %c0_11] : memref<8x8x128xf32, #tpu.memory_space<vmem>>, vector<1x8x128xf32>
    %19 = vector.shape_cast %18 : vector<1x8x128xf32> to vector<8x128xf32>
    %20 = vector.shape_cast %16 : vector<8x128xf32> to vector<1x8x128xf32>
    tpu.vector_store %arg4[%17, %c0_10, %c0_11], %20 {strides = array<i32>} : memref<8x8x128xf32, #tpu.memory_space<vmem>>, vector<1x8x128xf32>,
    %c1_i32 = arith.constant 1 : i32
    %cst_12 = arith.constant dense<0.000000e+00> : vector<8x128xf32>
    %21 = tpu.matmul %16, %3, %cst_12 {dimension_numbers = #tpu.dot_dimension_numbers<[1], [0], [0], [1], [0, 0, 1, 1], [], []>} : vector<8x128xf32>, vector<128x128xf32>, vector<8x128xf32> -> vector<8x128xf32>
    %22 = arith.index_cast %c1_i32 : i32 to index
    %c0_13 = arith.constant 0 : index
    %c0_14 = arith.constant 0 : index
    %23 = vector.load %arg2[%22, %c0_13, %c0_14] : memref<8x8x128xf32, #tpu.memory_space<vmem>>, vector<1x8x128xf32>
    %24 = vector.shape_cast %23 : vector<1x8x128xf32> to vector<8x128xf32>
    %25 = arith.addf %21, %24 : vector<8x128xf32>
    %cst_15 = arith.constant 8.000000e-01 : f32
    %26 = vector.broadcast %cst_15 : f32 to vector<8x128xf32>
    %27 = arith.mulf %26, %16 : vector<8x128xf32>
    %cst_16 = arith.constant 0.000000e+00 : f32
    %28 = vector.broadcast %cst_16 : f32 to vector<8x128xf32>
    %29 = arith.maximumf %25, %28 : vector<8x128xf32>
    %cst_17 = arith.constant 2.000000e-01 : f32
    %30 = vector.broadcast %cst_17 : f32 to vector<8x128xf32>
    %31 = arith.mulf %30, %29 : vector<8x128xf32>
    %32 = arith.addf %27, %31 : vector<8x128xf32>
    %33 = arith.index_cast %c1_i32 : i32 to index
    %c0_18 = arith.constant 0 : index
    %c0_19 = arith.constant 0 : index
    %34 = vector.load %arg4[%33, %c0_18, %c0_19] : memref<8x8x128xf32, #tpu.memory_space<vmem>>, vector<1x8x128xf32>
    %35 = vector.shape_cast %34 : vector<1x8x128xf32> to vector<8x128xf32>
    %36 = vector.shape_cast %32 : vector<8x128xf32> to vector<1x8x128xf32>
    tpu.vector_store %arg4[%33, %c0_18, %c0_19], %36 {strides = array<i32>} : memref<8x8x128xf32, #tpu.memory_space<vmem>>, vector<1x8x128xf32>,
    %c2_i32 = arith.constant 2 : i32
    %cst_20 = arith.constant dense<0.000000e+00> : vector<8x128xf32>
    %37 = tpu.matmul %32, %3, %cst_20 {dimension_numbers = #tpu.dot_dimension_numbers<[1], [0], [0], [1], [0, 0, 1, 1], [], []>} : vector<8x128xf32>, vector<128x128xf32>, vector<8x128xf32> -> vector<8x128xf32>
    %38 = arith.index_cast %c2_i32 : i32 to index
    %c0_21 = arith.constant 0 : index
    %c0_22 = arith.constant 0 : index
    %39 = vector.load %arg2[%38, %c0_21, %c0_22] : memref<8x8x128xf32, #tpu.memory_space<vmem>>, vector<1x8x128xf32>
    %40 = vector.shape_cast %39 : vector<1x8x128xf32> to vector<8x128xf32>
    %41 = arith.addf %37, %40 : vector<8x128xf32>
    %cst_23 = arith.constant 8.000000e-01 : f32
    %42 = vector.broadcast %cst_23 : f32 to vector<8x128xf32>
    %43 = arith.mulf %42, %32 : vector<8x128xf32>
    %cst_24 = arith.constant 0.000000e+00 : f32
    %44 = vector.broadcast %cst_24 : f32 to vector<8x128xf32>
    %45 = arith.maximumf %41, %44 : vector<8x128xf32>
    %cst_25 = arith.constant 2.000000e-01 : f32
    %46 = vector.broadcast %cst_25 : f32 to vector<8x128xf32>
    %47 = arith.mulf %46, %45 : vector<8x128xf32>
    %48 = arith.addf %43, %47 : vector<8x128xf32>
    %49 = arith.index_cast %c2_i32 : i32 to index
    %c0_26 = arith.constant 0 : index
    %c0_27 = arith.constant 0 : index
    %50 = vector.load %arg4[%49, %c0_26, %c0_27] : memref<8x8x128xf32, #tpu.memory_space<vmem>>, vector<1x8x128xf32>
    %51 = vector.shape_cast %50 : vector<1x8x128xf32> to vector<8x128xf32>
    %52 = vector.shape_cast %48 : vector<8x128xf32> to vector<1x8x128xf32>
    tpu.vector_store %arg4[%49, %c0_26, %c0_27], %52 {strides = array<i32>} : memref<8x8x128xf32, #tpu.memory_space<vmem>>, vector<1x8x128xf32>,
    %c3_i32 = arith.constant 3 : i32
    %cst_28 = arith.constant dense<0.000000e+00> : vector<8x128xf32>
    %53 = tpu.matmul %48, %3, %cst_28 {dimension_numbers = #tpu.dot_dimension_numbers<[1], [0], [0], [1], [0, 0, 1, 1], [], []>} : vector<8x128xf32>, vector<128x128xf32>, vector<8x128xf32> -> vector<8x128xf32>
    %54 = arith.index_cast %c3_i32 : i32 to index
    %c0_29 = arith.constant 0 : index
    %c0_30 = arith.constant 0 : index
    %55 = vector.load %arg2[%54, %c0_29, %c0_30] : memref<8x8x128xf32, #tpu.memory_space<vmem>>, vector<1x8x128xf32>
    %56 = vector.shape_cast %55 : vector<1x8x128xf32> to vector<8x128xf32>
    %57 = arith.addf %53, %56 : vector<8x128xf32>
    %cst_31 = arith.constant 8.000000e-01 : f32
    %58 = vector.broadcast %cst_31 : f32 to vector<8x128xf32>
    %59 = arith.mulf %58, %48 : vector<8x128xf32>
    %cst_32 = arith.constant 0.000000e+00 : f32
    %60 = vector.broadcast %cst_32 : f32 to vector<8x128xf32>
    %61 = arith.maximumf %57, %60 : vector<8x128xf32>
    %cst_33 = arith.constant 2.000000e-01 : f32
    %62 = vector.broadcast %cst_33 : f32 to vector<8x128xf32>
    %63 = arith.mulf %62, %61 : vector<8x128xf32>
    %64 = arith.addf %59, %63 : vector<8x128xf32>
    %65 = arith.index_cast %c3_i32 : i32 to index
    %c0_34 = arith.constant 0 : index
    %c0_35 = arith.constant 0 : index
    %66 = vector.load %arg4[%65, %c0_34, %c0_35] : memref<8x8x128xf32, #tpu.memory_space<vmem>>, vector<1x8x128xf32>
    %67 = vector.shape_cast %66 : vector<1x8x128xf32> to vector<8x128xf32>
    %68 = vector.shape_cast %64 : vector<8x128xf32> to vector<1x8x128xf32>
    tpu.vector_store %arg4[%65, %c0_34, %c0_35], %68 {strides = array<i32>} : memref<8x8x128xf32, #tpu.memory_space<vmem>>, vector<1x8x128xf32>,
    %c4_i32 = arith.constant 4 : i32
    %cst_36 = arith.constant dense<0.000000e+00> : vector<8x128xf32>
    %69 = tpu.matmul %64, %3, %cst_36 {dimension_numbers = #tpu.dot_dimension_numbers<[1], [0], [0], [1], [0, 0, 1, 1], [], []>} : vector<8x128xf32>, vector<128x128xf32>, vector<8x128xf32> -> vector<8x128xf32>
    %70 = arith.index_cast %c4_i32 : i32 to index
    %c0_37 = arith.constant 0 : index
    %c0_38 = arith.constant 0 : index
    %71 = vector.load %arg2[%70, %c0_37, %c0_38] : memref<8x8x128xf32, #tpu.memory_space<vmem>>, vector<1x8x128xf32>
    %72 = vector.shape_cast %71 : vector<1x8x128xf32> to vector<8x128xf32>
    %73 = arith.addf %69, %72 : vector<8x128xf32>
    %cst_39 = arith.constant 8.000000e-01 : f32
    %74 = vector.broadcast %cst_39 : f32 to vector<8x128xf32>
    %75 = arith.mulf %74, %64 : vector<8x128xf32>
    %cst_40 = arith.constant 0.000000e+00 : f32
    %76 = vector.broadcast %cst_40 : f32 to vector<8x128xf32>
    %77 = arith.maximumf %73, %76 : vector<8x128xf32>
    %cst_41 = arith.constant 2.000000e-01 : f32
    %78 = vector.broadcast %cst_41 : f32 to vector<8x128xf32>
    %79 = arith.mulf %78, %77 : vector<8x128xf32>
    %80 = arith.addf %75, %79 : vector<8x128xf32>
    %81 = arith.index_cast %c4_i32 : i32 to index
    %c0_42 = arith.constant 0 : index
    %c0_43 = arith.constant 0 : index
    %82 = vector.load %arg4[%81, %c0_42, %c0_43] : memref<8x8x128xf32, #tpu.memory_space<vmem>>, vector<1x8x128xf32>
    %83 = vector.shape_cast %82 : vector<1x8x128xf32> to vector<8x128xf32>
    %84 = vector.shape_cast %80 : vector<8x128xf32> to vector<1x8x128xf32>
    tpu.vector_store %arg4[%81, %c0_42, %c0_43], %84 {strides = array<i32>} : memref<8x8x128xf32, #tpu.memory_space<vmem>>, vector<1x8x128xf32>,
    %c5_i32 = arith.constant 5 : i32
    %cst_44 = arith.constant dense<0.000000e+00> : vector<8x128xf32>
    %85 = tpu.matmul %80, %3, %cst_44 {dimension_numbers = #tpu.dot_dimension_numbers<[1], [0], [0], [1], [0, 0, 1, 1], [], []>} : vector<8x128xf32>, vector<128x128xf32>, vector<8x128xf32> -> vector<8x128xf32>
    %86 = arith.index_cast %c5_i32 : i32 to index
    %c0_45 = arith.constant 0 : index
    %c0_46 = arith.constant 0 : index
    %87 = vector.load %arg2[%86, %c0_45, %c0_46] : memref<8x8x128xf32, #tpu.memory_space<vmem>>, vector<1x8x128xf32>
    %88 = vector.shape_cast %87 : vector<1x8x128xf32> to vector<8x128xf32>
    %89 = arith.addf %85, %88 : vector<8x128xf32>
    %cst_47 = arith.constant 8.000000e-01 : f32
    %90 = vector.broadcast %cst_47 : f32 to vector<8x128xf32>
    %91 = arith.mulf %90, %80 : vector<8x128xf32>
    %cst_48 = arith.constant 0.000000e+00 : f32
    %92 = vector.broadcast %cst_48 : f32 to vector<8x128xf32>
    %93 = arith.maximumf %89, %92 : vector<8x128xf32>
    %cst_49 = arith.constant 2.000000e-01 : f32
    %94 = vector.broadcast %cst_49 : f32 to vector<8x128xf32>
    %95 = arith.mulf %94, %93 : vector<8x128xf32>
    %96 = arith.addf %91, %95 : vector<8x128xf32>
    %97 = arith.index_cast %c5_i32 : i32 to index
    %c0_50 = arith.constant 0 : index
    %c0_51 = arith.constant 0 : index
    %98 = vector.load %arg4[%97, %c0_50, %c0_51] : memref<8x8x128xf32, #tpu.memory_space<vmem>>, vector<1x8x128xf32>
    %99 = vector.shape_cast %98 : vector<1x8x128xf32> to vector<8x128xf32>
    %100 = vector.shape_cast %96 : vector<8x128xf32> to vector<1x8x128xf32>
    tpu.vector_store %arg4[%97, %c0_50, %c0_51], %100 {strides = array<i32>} : memref<8x8x128xf32, #tpu.memory_space<vmem>>, vector<1x8x128xf32>,
    %c6_i32 = arith.constant 6 : i32
    %cst_52 = arith.constant dense<0.000000e+00> : vector<8x128xf32>
    %101 = tpu.matmul %96, %3, %cst_52 {dimension_numbers = #tpu.dot_dimension_numbers<[1], [0], [0], [1], [0, 0, 1, 1], [], []>} : vector<8x128xf32>, vector<128x128xf32>, vector<8x128xf32> -> vector<8x128xf32>
    %102 = arith.index_cast %c6_i32 : i32 to index
    %c0_53 = arith.constant 0 : index
    %c0_54 = arith.constant 0 : index
    %103 = vector.load %arg2[%102, %c0_53, %c0_54] : memref<8x8x128xf32, #tpu.memory_space<vmem>>, vector<1x8x128xf32>
    %104 = vector.shape_cast %103 : vector<1x8x128xf32> to vector<8x128xf32>
    %105 = arith.addf %101, %104 : vector<8x128xf32>
    %cst_55 = arith.constant 8.000000e-01 : f32
    %106 = vector.broadcast %cst_55 : f32 to vector<8x128xf32>
    %107 = arith.mulf %106, %96 : vector<8x128xf32>
    %cst_56 = arith.constant 0.000000e+00 : f32
    %108 = vector.broadcast %cst_56 : f32 to vector<8x128xf32>
    %109 = arith.maximumf %105, %108 : vector<8x128xf32>
    %cst_57 = arith.constant 2.000000e-01 : f32
    %110 = vector.broadcast %cst_57 : f32 to vector<8x128xf32>
    %111 = arith.mulf %110, %109 : vector<8x128xf32>
    %112 = arith.addf %107, %111 : vector<8x128xf32>
    %113 = arith.index_cast %c6_i32 : i32 to index
    %c0_58 = arith.constant 0 : index
    %c0_59 = arith.constant 0 : index
    %114 = vector.load %arg4[%113, %c0_58, %c0_59] : memref<8x8x128xf32, #tpu.memory_space<vmem>>, vector<1x8x128xf32>
    %115 = vector.shape_cast %114 : vector<1x8x128xf32> to vector<8x128xf32>
    %116 = vector.shape_cast %112 : vector<8x128xf32> to vector<1x8x128xf32>
    tpu.vector_store %arg4[%113, %c0_58, %c0_59], %116 {strides = array<i32>} : memref<8x8x128xf32, #tpu.memory_space<vmem>>, vector<1x8x128xf32>,
    %c7_i32 = arith.constant 7 : i32
    %cst_60 = arith.constant dense<0.000000e+00> : vector<8x128xf32>
    %117 = tpu.matmul %112, %3, %cst_60 {dimension_numbers = #tpu.dot_dimension_numbers<[1], [0], [0], [1], [0, 0, 1, 1], [], []>} : vector<8x128xf32>, vector<128x128xf32>, vector<8x128xf32> -> vector<8x128xf32>
    %118 = arith.index_cast %c7_i32 : i32 to index
    %c0_61 = arith.constant 0 : index
    %c0_62 = arith.constant 0 : index
    %119 = vector.load %arg2[%118, %c0_61, %c0_62] : memref<8x8x128xf32, #tpu.memory_space<vmem>>, vector<1x8x128xf32>
    %120 = vector.shape_cast %119 : vector<1x8x128xf32> to vector<8x128xf32>
    %121 = arith.addf %117, %120 : vector<8x128xf32>
    %cst_63 = arith.constant 8.000000e-01 : f32
    %122 = vector.broadcast %cst_63 : f32 to vector<8x128xf32>
    %123 = arith.mulf %122, %112 : vector<8x128xf32>
    %cst_64 = arith.constant 0.000000e+00 : f32
    %124 = vector.broadcast %cst_64 : f32 to vector<8x128xf32>
    %125 = arith.maximumf %121, %124 : vector<8x128xf32>
    %cst_65 = arith.constant 2.000000e-01 : f32
    %126 = vector.broadcast %cst_65 : f32 to vector<8x128xf32>
    %127 = arith.mulf %126, %125 : vector<8x128xf32>
    %128 = arith.addf %123, %127 : vector<8x128xf32>
    %129 = arith.index_cast %c7_i32 : i32 to index
    %c0_66 = arith.constant 0 : index
    %c0_67 = arith.constant 0 : index
    %130 = vector.load %arg4[%129, %c0_66, %c0_67] : memref<8x8x128xf32, #tpu.memory_space<vmem>>, vector<1x8x128xf32>
    %131 = vector.shape_cast %130 : vector<1x8x128xf32> to vector<8x128xf32>
    %132 = vector.shape_cast %128 : vector<8x128xf32> to vector<1x8x128xf32>
    tpu.vector_store %arg4[%129, %c0_66, %c0_67], %132 {strides = array<i32>} : memref<8x8x128xf32, #tpu.memory_space<vmem>>, vector<1x8x128xf32>,
    %c8_i32 = arith.constant 8 : i32
    %c0_68 = arith.constant 0 : index
    %c0_69 = arith.constant 0 : index
    %133 = vector.load %arg5[%c0_68, %c0_69] : memref<8x128xf32, #tpu.memory_space<vmem>>, vector<8x128xf32>
    tpu.vector_store %arg5[%c0_68, %c0_69], %128 {strides = array<i32>} : memref<8x128xf32, #tpu.memory_space<vmem>>, vector<8x128xf32>,
    return
  }
  func.func @transform_0(%arg0: i32, %arg1: i32) -> (i32, i32, i32) {
    %c0_i32 = arith.constant 0 : i32
    %c0_i32_0 = arith.constant 0 : i32
    return %arg1, %arg0, %c0_i32 : i32, i32, i32
  }
  func.func @transform_1(%arg0: i32, %arg1: i32) -> (i32, i32) {
    %c0_i32 = arith.constant 0 : i32
    %c0_i32_0 = arith.constant 0 : i32
    %c0_i32_1 = arith.constant 0 : i32
    return %c0_i32, %c0_i32_0 : i32, i32
  }
  func.func @transform_2(%arg0: i32, %arg1: i32) -> (i32, i32, i32) {
    %c0_i32 = arith.constant 0 : i32
    %c0_i32_0 = arith.constant 0 : i32
    return %arg1, %arg0, %c0_i32 : i32, i32, i32
  }
}

</mosaic_0001>

<bundles_post_ra>
// kernel: tpu_custom_call.1
= control target key start
LH: loop header
LB: loop body
LE: loop exit
PB: predicated region body
PF: predicated region fallthrough
CT: control target
= control target key end

     0   :  { %7 = vsyncpa [#allocation4], 0  ;;  %s592_s0 = inlined_call_operand.hbm [shape: f32[8,8,128], index: 0, kind: input, shape index: {}]   ;;  %s593_s1 = inlined_call_operand.hbm [shape: f32[128,128], index: 1, kind: input, shape index: {}]   ;;  %s594_s2 = inlined_call_operand.hbm [shape: f32[8,8,128], index: 2, kind: output, shape index: {}]  }
   0x1   :  { %8 = vsyncpa [#allocation7], 0 }
   0x2   :  { %9 = vsyncpa [#allocation5], 0  ;;  %s14_s11 = sshll.u32 %s592_s0, 4  ;;  %s393_s12 = smov [#allocation3]   ;;  %s15_s11 = int_to_ptr.hbm [resolvable:$true] %s14_s11 }
   0x3   :  { %s16_s13 = sshll.u32 %s393_s12, 4  ;;  %s27_s16 = sshll.u32 %s593_s1, 4  ;;  %s17_s13 = int_to_ptr.vmem [resolvable:$true] %s16_s13  ;;  %s28_s16 = int_to_ptr.hbm [resolvable:$true] %s27_s16 }
   0x4   :  { %s394_s17 = smov 128   ;;  %s395_s18 = smov 8  }
   0x5   :  { %22 = dma.hbm_to_vmem [thread:$0]  %s15_s11, 1024, %s17_s13, [#allocation4], %s394_s17, %s394_s17, %s395_s18  }
   0x6   :  { %s396_s19 = smov [#allocation6]  }
   0x7   :  { %s29_s20 = sshll.u32 %s396_s19, 4  ;;  %s30_s20 = int_to_ptr.vmem [resolvable:$true] %s29_s20 }
   0x8   :  { %35 = dma.hbm_to_vmem [thread:$0]  %s28_s16, 2048, %s30_s20, [#allocation7], %s394_s17, %s394_s17, %s395_s18  }
   0x9   :  { %387 = dma.done.wait [#allocation4], 1024  }
   0xa   :  { %388 = vsyncadd [#allocation4], 4294966272 }
   0xb   :  { %389 = dma.done.wait [#allocation7], 2048  }
   0xc   :  { %390 = vsyncadd [#allocation7], 4294965248  ;;  %v426_v0 = vld [vmem:[#allocation6 + $0x78] sm:$0xff]  ;;  %v428_v1 = vld [vmem:[#allocation6 + $0x70] sm:$0xff]  ;;  %v397_v16 = vmov 0.0   ;;  %s398_s0 = smov [#allocation8]  }
   0xd   :  { %67 = vmatpush.msra.mxu0 %v426_v0  ;;  %94 = vmatpush.msra.mxu1 %v426_v0  ;;  %v432_v2 = vld [vmem:[#allocation6 + $0x68] sm:$0xff]  ;;  %v438_v3 = vld [vmem:[#allocation6 + $0x60] sm:$0xff]  ;;  %v444_v4 = vld [vmem:[#allocation6 + $0x58] sm:$0xff]  ;;  %s293_s1 = sshll.u32 %s398_s0, 4  ;;  %s295_s23 = sshll.u32 %s594_s2, 4  ;;  %s294_s1 = int_to_ptr.vmem [resolvable:$true] %s293_s1  ;;  %s296_s23 = int_to_ptr.hbm [resolvable:$true] %s295_s23 }
   0xe   :  { %122 = vmatpush.msra.mxu2 %v426_v0  ;;  %150 = vmatpush.msra.mxu3 %v426_v0  ;;  %v450_v5 = vld [vmem:[#allocation6 + $0x50] sm:$0xff]  ;;  %v456_v6 = vld [vmem:[#allocation6 + $0x48] sm:$0xff]  ;;  %v462_v7 = vld [vmem:[#allocation6 + $0x40] sm:$0xff] }
   0xf   :  { %68 = vmatpush.msra.mxu0 %v428_v1  ;;  %95 = vmatpush.msra.mxu1 %v428_v1  ;;  %v468_v8 = vld [vmem:[#allocation6 + $0x38] sm:$0xff]  ;;  %v474_v9 = vld [vmem:[#allocation6 + $0x30] sm:$0xff]  ;;  %v480_v10 = vld [vmem:[#allocation6 + $0x28] sm:$0xff] }
  0x10   :  { %123 = vmatpush.msra.mxu2 %v428_v1  ;;  %151 = vmatpush.msra.mxu3 %v428_v1  ;;  %v486_v11 = vld [vmem:[#allocation6 + $0x20] sm:$0xff]  ;;  %v492_v12 = vld [vmem:[#allocation6 + $0x18] sm:$0xff]  ;;  %v498_v13 = vld [vmem:[#allocation6 + $0x10] sm:$0xff] }
  0x11   :  { %69 = vmatpush.msra.mxu0 %v432_v2  ;;  %96 = vmatpush.msra.mxu1 %v432_v2  ;;  %v504_v14 = vld [vmem:[#allocation6 + $0x8] sm:$0xff]  ;;  %v510_v15 = vld [vmem:[#allocation6] sm:$0xff]  ;;  %v121_v29 = vld [vmem:[#allocation3 + $0x10] sm:$0xff] }
  0x12   :  { %124 = vmatpush.msra.mxu2 %v432_v2  ;;  %152 = vmatpush.msra.mxu3 %v432_v2  ;;  %v66_v17 = vld [vmem:[#allocation3] sm:$0xff]  ;;  %v93_v22 = vld [vmem:[#allocation3 + $0x8] sm:$0xff]  ;;  %v149_v36 = vld [vmem:[#allocation3 + $0x18] sm:$0xff] }
  0x13   :  { %70 = vmatpush.msra.mxu0 %v438_v3  ;;  %97 = vmatpush.msra.mxu1 %v438_v3  ;;  %v177_v43 = vld [vmem:[#allocation3 + $0x20] sm:$0xff]  ;;  %v205_v50 = vld [vmem:[#allocation3 + $0x28] sm:$0xff]  ;;  %v233_v57 = vld [vmem:[#allocation3 + $0x30] sm:$0xff] }
  0x14   :  { %125 = vmatpush.msra.mxu2 %v438_v3  ;;  %153 = vmatpush.msra.mxu3 %v438_v3 }
  0x15   :  { %71 = vmatpush.msra.mxu0 %v444_v4  ;;  %98 = vmatpush.msra.mxu1 %v444_v4 }
  0x16   :  { %126 = vmatpush.msra.mxu2 %v444_v4  ;;  %154 = vmatpush.msra.mxu3 %v444_v4 }
  0x17   :  { %72 = vmatpush.msra.mxu0 %v450_v5  ;;  %99 = vmatpush.msra.mxu1 %v450_v5 }
  0x18   :  { %127 = vmatpush.msra.mxu2 %v450_v5  ;;  %155 = vmatpush.msra.mxu3 %v450_v5 }
  0x19   :  { %73 = vmatpush.msra.mxu0 %v456_v6  ;;  %100 = vmatpush.msra.mxu1 %v456_v6 }
  0x1a   :  { %128 = vmatpush.msra.mxu2 %v456_v6  ;;  %156 = vmatpush.msra.mxu3 %v456_v6 }
  0x1b   :  { %74 = vmatpush.msra.mxu0 %v462_v7  ;;  %101 = vmatpush.msra.mxu1 %v462_v7 }
  0x1c   :  { %129 = vmatpush.msra.mxu2 %v462_v7  ;;  %157 = vmatpush.msra.mxu3 %v462_v7 }
  0x1d   :  { %75 = vmatpush.msra.mxu0 %v468_v8  ;;  %102 = vmatpush.msra.mxu1 %v468_v8 }
  0x1e   :  { %130 = vmatpush.msra.mxu2 %v468_v8  ;;  %158 = vmatpush.msra.mxu3 %v468_v8 }
  0x1f   :  { %76 = vmatpush.msra.mxu0 %v474_v9  ;;  %103 = vmatpush.msra.mxu1 %v474_v9 }
  0x20   :  { %131 = vmatpush.msra.mxu2 %v474_v9  ;;  %159 = vmatpush.msra.mxu3 %v474_v9 }
  0x21   :  { %77 = vmatpush.msra.mxu0 %v480_v10  ;;  %104 = vmatpush.msra.mxu1 %v480_v10 }
  0x22   :  { %132 = vmatpush.msra.mxu2 %v480_v10  ;;  %160 = vmatpush.msra.mxu3 %v480_v10 }
  0x23   :  { %78 = vmatpush.msra.mxu0 %v486_v11  ;;  %105 = vmatpush.msra.mxu1 %v486_v11 }
  0x24   :  { %133 = vmatpush.msra.mxu2 %v486_v11  ;;  %161 = vmatpush.msra.mxu3 %v486_v11 }
  0x25   :  { %79 = vmatpush.msra.mxu0 %v492_v12  ;;  %106 = vmatpush.msra.mxu1 %v492_v12 }
  0x26   :  { %134 = vmatpush.msra.mxu2 %v492_v12  ;;  %162 = vmatpush.msra.mxu3 %v492_v12 }
  0x27   :  { %80 = vmatpush.msra.mxu0 %v498_v13  ;;  %107 = vmatpush.msra.mxu1 %v498_v13 }
  0x28   :  { %135 = vmatpush.msra.mxu2 %v498_v13  ;;  %163 = vmatpush.msra.mxu3 %v498_v13 }
  0x29   :  { %81 = vmatpush.msra.mxu0 %v504_v14  ;;  %108 = vmatpush.msra.mxu1 %v504_v14 }
  0x2a   :  { %136 = vmatpush.msra.mxu2 %v504_v14  ;;  %164 = vmatpush.msra.mxu3 %v504_v14 }
  0x2b   :  { %82 = vmatpush.msra.mxu0 %v510_v15  ;;  %109 = vmatpush.msra.mxu1 %v510_v15 }
  0x2c   :  { %83 = vmatmul.f32.vlgmr.msra.gmra.mxu0 %v397_v16  ;;  %137 = vmatpush.msra.mxu2 %v510_v15 }
  0x2d   :  { %165 = vmatpush.msra.mxu3 %v510_v15  ;;  %178 = vmatpush.msrb.mxu0 %v426_v0 }
  0x2e   :  { %206 = vmatpush.msrb.mxu1 %v426_v0  ;;  %234 = vmatpush.msrb.mxu2 %v426_v0 }
  0x2f   :  { %179 = vmatpush.msrb.mxu0 %v428_v1  ;;  %262 = vmatpush.msrb.mxu3 %v426_v0  ;;  %v261_v0 = vld [vmem:[#allocation3 + $0x38] sm:$0xff] }
  0x30   :  { %207 = vmatpush.msrb.mxu1 %v428_v1  ;;  %235 = vmatpush.msrb.mxu2 %v428_v1 }
  0x31   :  { %180 = vmatpush.msrb.mxu0 %v432_v2  ;;  %263 = vmatpush.msrb.mxu3 %v428_v1 }
  0x32   :  { %208 = vmatpush.msrb.mxu1 %v432_v2  ;;  %236 = vmatpush.msrb.mxu2 %v432_v2 }
  0x33   :  { %181 = vmatpush.msrb.mxu0 %v438_v3  ;;  %264 = vmatpush.msrb.mxu3 %v432_v2 }
  0x34   :  { %209 = vmatpush.msrb.mxu1 %v438_v3  ;;  %237 = vmatpush.msrb.mxu2 %v438_v3 }
  0x35   :  { %182 = vmatpush.msrb.mxu0 %v444_v4  ;;  %265 = vmatpush.msrb.mxu3 %v438_v3 }
  0x36   :  { %210 = vmatpush.msrb.mxu1 %v444_v4  ;;  %238 = vmatpush.msrb.mxu2 %v444_v4 }
  0x37   :  { %183 = vmatpush.msrb.mxu0 %v450_v5  ;;  %266 = vmatpush.msrb.mxu3 %v444_v4 }
  0x38   :  { %211 = vmatpush.msrb.mxu1 %v450_v5  ;;  %239 = vmatpush.msrb.mxu2 %v450_v5 }
  0x39   :  { %184 = vmatpush.msrb.mxu0 %v456_v6  ;;  %267 = vmatpush.msrb.mxu3 %v450_v5 }
  0x3a   :  { %212 = vmatpush.msrb.mxu1 %v456_v6  ;;  %240 = vmatpush.msrb.mxu2 %v456_v6 }
  0x3b   :  { %185 = vmatpush.msrb.mxu0 %v462_v7  ;;  %268 = vmatpush.msrb.mxu3 %v456_v6 }
  0x3c   :  { %213 = vmatpush.msrb.mxu1 %v462_v7  ;;  %241 = vmatpush.msrb.mxu2 %v462_v7 }
  0x3d   :  { %186 = vmatpush.msrb.mxu0 %v468_v8  ;;  %269 = vmatpush.msrb.mxu3 %v462_v7 }
  0x3e   :  { %214 = vmatpush.msrb.mxu1 %v468_v8  ;;  %242 = vmatpush.msrb.mxu2 %v468_v8 }
  0x3f   :  { %187 = vmatpush.msrb.mxu0 %v474_v9  ;;  %270 = vmatpush.msrb.mxu3 %v468_v8 }
  0x40   :  { %215 = vmatpush.msrb.mxu1 %v474_v9  ;;  %243 = vmatpush.msrb.mxu2 %v474_v9 }
  0x41   :  { %188 = vmatpush.msrb.mxu0 %v480_v10  ;;  %271 = vmatpush.msrb.mxu3 %v474_v9 }
  0x42   :  { %216 = vmatpush.msrb.mxu1 %v480_v10  ;;  %244 = vmatpush.msrb.mxu2 %v480_v10 }
  0x43   :  { %189 = vmatpush.msrb.mxu0 %v486_v11  ;;  %272 = vmatpush.msrb.mxu3 %v480_v10 }
  0x44   :  { %217 = vmatpush.msrb.mxu1 %v486_v11  ;;  %245 = vmatpush.msrb.mxu2 %v486_v11 }
  0x45   :  { %190 = vmatpush.msrb.mxu0 %v492_v12  ;;  %273 = vmatpush.msrb.mxu3 %v486_v11 }
  0x46   :  { %218 = vmatpush.msrb.mxu1 %v492_v12  ;;  %246 = vmatpush.msrb.mxu2 %v492_v12 }
  0x47   :  { %191 = vmatpush.msrb.mxu0 %v498_v13  ;;  %274 = vmatpush.msrb.mxu3 %v492_v12 }
  0x48   :  { %219 = vmatpush.msrb.mxu1 %v498_v13  ;;  %247 = vmatpush.msrb.mxu2 %v498_v13 }
  0x49   :  { %192 = vmatpush.msrb.mxu0 %v504_v14  ;;  %275 = vmatpush.msrb.mxu3 %v498_v13 }
  0x4a   :  { %220 = vmatpush.msrb.mxu1 %v504_v14  ;;  %248 = vmatpush.msrb.mxu2 %v504_v14 }
  0x4b   :  { %193 = vmatpush.msrb.mxu0 %v510_v15  ;;  %276 = vmatpush.msrb.mxu3 %v504_v14 }
  0x4c   :  { %221 = vmatpush.msrb.mxu1 %v510_v15  ;;  %249 = vmatpush.msrb.mxu2 %v510_v15 }
  0x4d   :  { %277 = vmatpush.msrb.mxu3 %v510_v15 }
  0xa9   :  { %v84_v18 = vpop.f32.mrf.mxu0 }
  0xaa   :  { %v85_v19 = vadd.f32 %v84_v18, %v66_v17 }
  0xac   :  { %v88_v20 = vmax.f32 %v85_v19, 0.0 }
  0xae   :  { %v89_v21 = vmul.f32 0.2, %v88_v20 }
  0xb0   :  { %91 = vst [vmem:[#allocation8] sm:$0xff] %v89_v21  ;;  %110 = vmatmul.f32.vlgmr.msra.gmra.mxu1 %v89_v21  ;;  %v114_v26 = vmul.f32 0.8, %v89_v21 }
 0x12d   :  { %v111_v23 = vpop.f32.mrf.mxu1 }
 0x12e   :  { %v112_v24 = vadd.f32 %v111_v23, %v93_v22 }
 0x130   :  { %v115_v25 = vmax.f32 %v112_v24, 0.0 }
 0x132   :  { %v116_v27 = vmul.f32 0.2, %v115_v25 }
 0x134   :  { %v117_v28 = vadd.f32 %v116_v27, %v114_v26 }
 0x136   :  { %119 = vst [vmem:[#allocation8 + $0x8] sm:$0xff] %v117_v28  ;;  %138 = vmatmul.f32.vlgmr.msra.gmra.mxu2 %v117_v28  ;;  %v142_v33 = vmul.f32 0.8, %v117_v28 }
 0x1b9   :  { %v139_v30 = vpop.f32.mrf.mxu2 }
 0x1ba   :  { %v140_v31 = vadd.f32 %v139_v30, %v121_v29 }
 0x1bc   :  { %v143_v32 = vmax.f32 %v140_v31, 0.0 }
 0x1be   :  { %v144_v34 = vmul.f32 0.2, %v143_v32 }
 0x1c0   :  { %v145_v35 = vadd.f32 %v144_v34, %v142_v33 }
 0x1c2   :  { %147 = vst [vmem:[#allocation8 + $0x10] sm:$0xff] %v145_v35  ;;  %166 = vmatmul.f32.vlgmr.msra.gmra.mxu3 %v145_v35  ;;  %v170_v40 = vmul.f32 0.8, %v145_v35 }
 0x245   :  { %v167_v37 = vpop.f32.mrf.mxu3 }
 0x246   :  { %v168_v38 = vadd.f32 %v167_v37, %v149_v36 }
 0x248   :  { %v171_v39 = vmax.f32 %v168_v38, 0.0 }
 0x24a   :  { %v172_v41 = vmul.f32 0.2, %v171_v39 }
 0x24c   :  { %v173_v42 = vadd.f32 %v172_v41, %v170_v40 }
 0x24e   :  { %175 = vst [vmem:[#allocation8 + $0x18] sm:$0xff] %v173_v42  ;;  %194 = vmatmul.f32.vlgmr.msrb.gmra.mxu0 %v173_v42  ;;  %v198_v47 = vmul.f32 0.8, %v173_v42 }
 0x2cb   :  { %v195_v44 = vpop.f32.mrf.mxu0 }
 0x2cc   :  { %v196_v45 = vadd.f32 %v195_v44, %v177_v43 }
 0x2ce   :  { %v199_v46 = vmax.f32 %v196_v45, 0.0 }
 0x2d0   :  { %v200_v48 = vmul.f32 0.2, %v199_v46 }
 0x2d2   :  { %v201_v49 = vadd.f32 %v200_v48, %v198_v47 }
 0x2d4   :  { %203 = vst [vmem:[#allocation8 + $0x20] sm:$0xff] %v201_v49  ;;  %222 = vmatmul.f32.vlgmr.msrb.gmra.mxu1 %v201_v49  ;;  %v226_v54 = vmul.f32 0.8, %v201_v49 }
 0x351   :  { %v223_v51 = vpop.f32.mrf.mxu1 }
 0x352   :  { %v224_v52 = vadd.f32 %v223_v51, %v205_v50 }
 0x354   :  { %v227_v53 = vmax.f32 %v224_v52, 0.0 }
 0x356   :  { %v228_v55 = vmul.f32 0.2, %v227_v53 }
 0x358   :  { %v229_v56 = vadd.f32 %v228_v55, %v226_v54 }
 0x35a   :  { %231 = vst [vmem:[#allocation8 + $0x28] sm:$0xff] %v229_v56  ;;  %250 = vmatmul.f32.vlgmr.msrb.gmra.mxu2 %v229_v56  ;;  %v254_v61 = vmul.f32 0.8, %v229_v56 }
 0x3dd   :  { %v251_v58 = vpop.f32.mrf.mxu2 }
 0x3de   :  { %v252_v59 = vadd.f32 %v251_v58, %v233_v57 }
 0x3e0   :  { %v255_v60 = vmax.f32 %v252_v59, 0.0 }
 0x3e2   :  { %v256_v62 = vmul.f32 0.2, %v255_v60 }
 0x3e4   :  { %v257_v63 = vadd.f32 %v256_v62, %v254_v61 }
 0x3e6   :  { %259 = vst [vmem:[#allocation8 + $0x30] sm:$0xff] %v257_v63  ;;  %278 = vmatmul.f32.vlgmr.msrb.gmra.mxu3 %v257_v63  ;;  %v282_v4 = vmul.f32 0.8, %v257_v63 }
 0x469   :  { %v279_v1 = vpop.f32.mrf.mxu3 }
 0x46a   :  { %v280_v2 = vadd.f32 %v279_v1, %v261_v0 }
 0x46c   :  { %v283_v3 = vmax.f32 %v280_v2, 0.0 }
 0x46e   :  { %v284_v5 = vmul.f32 0.2, %v283_v3 }
 0x470   :  { %v285_v6 = vadd.f32 %v284_v5, %v282_v4 }
 0x472   :  { %287 = vst [vmem:[#allocation8 + $0x38] sm:$0xff] %v285_v6 }
 0x473   :  { %301 = dma.vmem_to_hbm [thread:$0]  %s294_s1, 1024, %s296_s23, [#allocation5], %s394_s17, %s394_s17, %s395_s18  }
 0x474   :  { %391 = dma.done.wait [#allocation5], 1024  }
 0x475   :  { %392 = vsyncadd [#allocation5], 4294966272 }
 0x476   :  { %306 = vsyncpa [#allocation4], 1 }
 0x477   :  { %307 = vsyncpa [#allocation7], 1 }
 0x478   :  { %308 = vsyncpa [#allocation5], 1 }

</bundles_post_ra>
